<compile_context>
chip_gen: v6e
topology: v6e:2x2x1
jax: 0.10.0
libtpu: 0.0.40
codegen_flags: <defaults>
</compile_context>

<pallas_src>
import functools

import jax
import jax.numpy as jnp
from jax.experimental import pallas as pl
from jax.experimental.pallas import tpu as pltpu

LANES = 128
SUBLANES = 8
MAX_TILE_ROWS = 4096      # 2 MiB per input block; 8 MiB double-buffered total
NUM_CORES = 2             # v7x dual-TC split; falls back to 1 when it doesn't divide


def _round_up(x, m):
    return ((x + m - 1) // m) * m


def _cdiv(a, b):
    return -(-a // b)


def _balanced_bce_kernel(pred_ref, target_ref, out_ref, acc_ref, *,
                         alpha, n_valid, has_tail, last_block_start):
    c = pl.program_id(0)
    j = pl.program_id(1)

    @pl.when(j == 0)
    def _():
        acc_ref[...] = jnp.zeros_like(acc_ref)

    x = pred_ref[...].astype(jnp.float32)
    y = target_ref[...].astype(jnp.float32)

    # binary_cross_entropy_with_logits, reduction='none' (numerically stable):
    #   max(x, 0) - x*y + log(1 + exp(-|x|))
    bce = jnp.maximum(x, 0.0) - x * y + jnp.log1p(jnp.exp(-jnp.abs(x)))

    # weights = (y == 0) * alpha + (y == 1) * (1 - alpha)   (exact module semantics;
    # any target not exactly 0 or 1 gets weight 0, matching the PyTorch code)
    w = jnp.where(y == 0.0, jnp.float32(alpha),
                  jnp.where(y == 1.0, jnp.float32(1.0 - alpha), jnp.float32(0.0)))
    contrib = bce * w

    block_rows = pred_ref.shape[0]

    def fold(v):
        # (block_rows, 128) -> (8, 128) via sublane-group adds (pure VPU; the
        # reshape does not cross (8,128) tile boundaries).
        return v.reshape(block_rows // SUBLANES, SUBLANES, LANES).sum(axis=0)

    if has_tail:
        is_last = jnp.logical_and(c == pl.num_programs(0) - 1,
                                  j == pl.num_programs(1) - 1)

        @pl.when(jnp.logical_not(is_last))
        def _():
            acc_ref[...] += fold(contrib)

        @pl.when(is_last)
        def _():
            # Only the globally-last block can contain out-of-range rows / the
            # sub-row pad; mask them out here (compile-time-constant offsets).
            row = jax.lax.broadcasted_iota(jnp.int32, (block_rows, LANES), 0)
            lane = jax.lax.broadcasted_iota(jnp.int32, (block_rows, LANES), 1)
            idx = last_block_start + row * LANES + lane
            acc_ref[...] += fold(jnp.where(idx < n_valid, contrib, 0.0))
    else:
        acc_ref[...] += fold(contrib)

    @pl.when(j == pl.num_programs(1) - 1)
    def _():
        out_ref[0] = acc_ref[...]


def balanced_bce_loss(pred, target, alpha=0.5):
    """Pallas-TPU implementation of BalancedBCELoss.forward (returns a scalar)."""
    assert pred.shape == target.shape
    n_valid = int(pred.size)
    if n_valid == 0:
        # torch's .mean() over an empty tensor is nan
        return jnp.float32(float("nan"))

    pred_flat = pred.reshape(-1)
    target_flat = target.reshape(-1)

    # Lane-dense 2-D view. Only a sub-row (<128 element) pad is ever needed to
    # form the view; 128-aligned inputs (like the demo) take the no-copy path.
    n_lane_pad = (-n_valid) % LANES
    if n_lane_pad:
        pred_flat = jnp.pad(pred_flat, (0, n_lane_pad))
        target_flat = jnp.pad(target_flat, (0, n_lane_pad))
    n_rows = (n_valid + n_lane_pad) // LANES

    pred2d = pred_flat.reshape(n_rows, LANES)
    target2d = target_flat.reshape(n_rows, LANES)

    # Large blocks (2 MiB per input at 4096 rows) keep the HBM-bound pipeline
    # near roofline; 2 inputs x 2 buffers = 8 MiB fits every chip's default
    # scoped VMEM, so no vmem_limit_bytes tuning is needed.
    block_rows = min(MAX_TILE_ROWS, _round_up(n_rows, SUBLANES))
    total_blocks = _cdiv(n_rows, block_rows)

    # Shard across the leading ("parallel") axis only when it divides evenly so
    # that exactly one block — the globally-last one — can contain the tail.
    n_cores = NUM_CORES if (total_blocks % NUM_CORES == 0) else 1
    steps_per_core = total_blocks // n_cores

    has_tail = (total_blocks * block_rows != n_rows) or (n_lane_pad != 0)
    last_block_start = (total_blocks - 1) * block_rows * LANES

    kernel = functools.partial(_balanced_bce_kernel, alpha=float(alpha),
                               n_valid=n_valid, has_tail=has_tail,
                               last_block_start=last_block_start)

    partials = pl.pallas_call(
        kernel,
        out_shape=jax.ShapeDtypeStruct((n_cores, SUBLANES, LANES), jnp.float32),
        grid_spec=pltpu.PrefetchScalarGridSpec(
            num_scalar_prefetch=0,
            grid=(n_cores, steps_per_core),
            in_specs=[
                pl.BlockSpec((block_rows, LANES),
                             lambda c, j: (c * steps_per_core + j, 0)),
                pl.BlockSpec((block_rows, LANES),
                             lambda c, j: (c * steps_per_core + j, 0)),
            ],
            out_specs=pl.BlockSpec((1, SUBLANES, LANES), lambda c, j: (c, 0, 0)),
            scratch_shapes=[pltpu.VMEM((SUBLANES, LANES), jnp.float32)],
        ),
        compiler_params=pltpu.CompilerParams(
            dimension_semantics=("parallel", "arbitrary")),
    )(pred2d, target2d)

    return jnp.sum(partials) / jnp.float32(n_valid)


def balanced_bce_loss_ref(pred, target, alpha=0.5):
    """Pure-JAX reference mirroring the PyTorch module."""
    x = pred.astype(jnp.float32)
    y = target.astype(jnp.float32)
    bce = jnp.maximum(x, 0.0) - x * y + jnp.log1p(jnp.exp(-jnp.abs(x)))
    w = (y == 0.0).astype(jnp.float32) * alpha + (y == 1.0).astype(jnp.float32) * (1.0 - alpha)
    return jnp.mean(bce * w)


if __name__ == "__main__":
    key = jax.random.PRNGKey(0)
    k_pred, k_tgt = jax.random.split(key)

    # Small NCHW-shaped logits / binary targets, as the loss would see them.
    shape = (2, 4, 16, 16)
    pred = jax.random.normal(k_pred, shape, dtype=jnp.float32)
    target = jax.random.bernoulli(k_tgt, 0.3, shape).astype(jnp.float32)

    loss = balanced_bce_loss(pred, target, alpha=0.5)
    loss = jax.block_until_ready(loss)

    ref = balanced_bce_loss_ref(pred, target, alpha=0.5)
    assert jnp.allclose(loss, ref, rtol=1e-5, atol=1e-6), (loss, ref)

    print("KERNEL_OK")
</pallas_src>

<mosaic_0001>
module attributes {stable_mosaic.version = 11 : i64} {
  func.func @_balanced_bce_kernel(%arg0: i32, %arg1: i32, %arg2: memref<16x128xf32, #tpu.memory_space<vmem>>, %arg3: memref<16x128xf32, #tpu.memory_space<vmem>>, %arg4: memref<1x8x128xf32, #tpu.memory_space<vmem>>, %arg5: memref<8x128xf32, #tpu.memory_space<vmem>>) attributes {dimension_semantics = [#tpu.dimension_semantics<parallel>, #tpu.dimension_semantics<arbitrary>], iteration_bounds = array<i64: 1, 1>, scalar_prefetch = 0 : i64, scratch_operands = 1 : i64, tpu.core_type = #tpu.core_type<tc>, window_params = [{transform_indices = @transform_0, window_bounds = array<i64: 16, 128>}, {transform_indices = @transform_1, window_bounds = array<i64: 16, 128>}, {transform_indices = @transform_2, window_bounds = array<i64: 1, 8, 128>}]} {
    %c0_i32 = arith.constant 0 : i32
    %0 = arith.cmpi eq, %arg1, %c0_i32 : i32
    %1 = arith.extui %0 : i1 to i32
    %c0_i32_0 = arith.constant 0 : i32
    %2 = arith.cmpi ne, %1, %c0_i32_0 : i32
    scf.if %2 {
      %cst_17 = arith.constant 0.000000e+00 : f32
      %33 = vector.broadcast %cst_17 : f32 to vector<8x128xf32>
      %c0_18 = arith.constant 0 : index
      %c0_19 = arith.constant 0 : index
      %34 = vector.load %arg5[%c0_18, %c0_19] : memref<8x128xf32, #tpu.memory_space<vmem>>, vector<8x128xf32>
      tpu.vector_store %arg5[%c0_18, %c0_19], %33 {strides = array<i32>} : memref<8x128xf32, #tpu.memory_space<vmem>>, vector<8x128xf32>,
    } else {
    }
    %c0 = arith.constant 0 : index
    %c0_1 = arith.constant 0 : index
    %3 = vector.load %arg2[%c0, %c0_1] : memref<16x128xf32, #tpu.memory_space<vmem>>, vector<16x128xf32>
    %c0_2 = arith.constant 0 : index
    %c0_3 = arith.constant 0 : index
    %4 = vector.load %arg3[%c0_2, %c0_3] : memref<16x128xf32, #tpu.memory_space<vmem>>, vector<16x128xf32>
    %cst = arith.constant 0.000000e+00 : f32
    %5 = vector.broadcast %cst : f32 to vector<16x128xf32>
    %6 = arith.maximumf %3, %5 : vector<16x128xf32>
    %7 = arith.mulf %3, %4 : vector<16x128xf32>
    %8 = arith.subf %6, %7 : vector<16x128xf32>
    %9 = math.absf %3 : vector<16x128xf32>
    %cst_4 = arith.constant 0.000000e+00 : f32
    %10 = vector.broadcast %cst_4 : f32 to vector<16x128xf32>
    %11 = arith.subf %10, %9 : vector<16x128xf32>
    %12 = math.exp %11 : vector<16x128xf32>
    %13 = math.log1p %12 : vector<16x128xf32>
    %14 = arith.addf %8, %13 : vector<16x128xf32>
    %cst_5 = arith.constant 0.000000e+00 : f32
    %15 = vector.broadcast %cst_5 : f32 to vector<16x128xf32>
    %16 = arith.cmpf oeq, %4, %15 : vector<16x128xf32>
    %cst_6 = arith.constant 1.000000e+00 : f32
    %17 = vector.broadcast %cst_6 : f32 to vector<16x128xf32>
    %18 = arith.cmpf oeq, %4, %17 : vector<16x128xf32>
    %cst_7 = arith.constant 5.000000e-01 : f32
    %cst_8 = arith.constant 0.000000e+00 : f32
    %19 = vector.broadcast %cst_7 : f32 to vector<16x128xf32>
    %20 = vector.broadcast %cst_8 : f32 to vector<16x128xf32>
    %21 = arith.select %18, %19, %20 : vector<16x128xi1>, vector<16x128xf32>
    %cst_9 = arith.constant 5.000000e-01 : f32
    %22 = vector.broadcast %cst_9 : f32 to vector<16x128xf32>
    %23 = arith.select %16, %22, %21 : vector<16x128xi1>, vector<16x128xf32>
    %24 = arith.mulf %14, %23 : vector<16x128xf32>
    %c0_10 = arith.constant 0 : index
    %c0_11 = arith.constant 0 : index
    %25 = vector.load %arg5[%c0_10, %c0_11] : memref<8x128xf32, #tpu.memory_space<vmem>>, vector<8x128xf32>
    %26 = vector.shape_cast %24 : vector<16x128xf32> to vector<2x8x128xf32>
    %cst_12 = arith.constant dense<0.000000e+00> : vector<8x128xf32>
    %27 = vector.multi_reduction <add>, %26, %cst_12 [0] : vector<2x8x128xf32> to vector<8x128xf32>
    %28 = arith.addf %25, %27 : vector<8x128xf32>
    %c0_13 = arith.constant 0 : index
    %c0_14 = arith.constant 0 : index
    %29 = vector.load %arg5[%c0_13, %c0_14] : memref<8x128xf32, #tpu.memory_space<vmem>>, vector<8x128xf32>
    tpu.vector_store %arg5[%c0_13, %c0_14], %28 {strides = array<i32>} : memref<8x128xf32, #tpu.memory_space<vmem>>, vector<8x128xf32>,
    %c0_i32_15 = arith.constant 0 : i32
    %30 = arith.cmpi eq, %arg1, %c0_i32_15 : i32
    %31 = arith.extui %30 : i1 to i32
    %c0_i32_16 = arith.constant 0 : i32
    %32 = arith.cmpi ne, %31, %c0_i32_16 : i32
    scf.if %32 {
      %c0_17 = arith.constant 0 : index
      %c0_18 = arith.constant 0 : index
      %33 = vector.load %arg5[%c0_17, %c0_18] : memref<8x128xf32, #tpu.memory_space<vmem>>, vector<8x128xf32>
      %c0_19 = arith.constant 0 : index
      %c0_20 = arith.constant 0 : index
      %c0_21 = arith.constant 0 : index
      %34 = vector.load %arg4[%c0_19, %c0_20, %c0_21] : memref<1x8x128xf32, #tpu.memory_space<vmem>>, vector<1x8x128xf32>
      %35 = vector.shape_cast %34 : vector<1x8x128xf32> to vector<8x128xf32>
      %36 = vector.shape_cast %33 : vector<8x128xf32> to vector<1x8x128xf32>
      tpu.vector_store %arg4[%c0_19, %c0_20, %c0_21], %36 {strides = array<i32>} : memref<1x8x128xf32, #tpu.memory_space<vmem>>, vector<1x8x128xf32>,
    } else {
    }
    return
  }
  func.func @transform_0(%arg0: i32, %arg1: i32) -> (i32, i32) {
    %c1_i32 = arith.constant 1 : i32
    %0 = arith.muli %arg0, %c1_i32 : i32
    %1 = arith.addi %0, %arg1 : i32
    %c0_i32 = arith.constant 0 : i32
    %c0_i32_0 = arith.constant 0 : i32
    return %1, %c0_i32 : i32, i32
  }
  func.func @transform_1(%arg0: i32, %arg1: i32) -> (i32, i32) {
    %c1_i32 = arith.constant 1 : i32
    %0 = arith.muli %arg0, %c1_i32 : i32
    %1 = arith.addi %0, %arg1 : i32
    %c0_i32 = arith.constant 0 : i32
    %c0_i32_0 = arith.constant 0 : i32
    return %1, %c0_i32 : i32, i32
  }
  func.func @transform_2(%arg0: i32, %arg1: i32) -> (i32, i32, i32) {
    %c0_i32 = arith.constant 0 : i32
    %c0_i32_0 = arith.constant 0 : i32
    %c0_i32_1 = arith.constant 0 : i32
    return %arg0, %c0_i32, %c0_i32_0 : i32, i32, i32
  }
}

</mosaic_0001>

<bundles_post_ra>
// kernel: tpu_custom_call.1
= control target key start
LH: loop header
LB: loop body
LE: loop exit
PB: predicated region body
PF: predicated region fallthrough
CT: control target
= control target key end

     0   :  { %7 = vsyncpa [#allocation4], 0  ;;  %s241_s0 = inlined_call_operand.hbm [shape: f32[16,128], index: 0, kind: input, shape index: {}]   ;;  %s242_s1 = inlined_call_operand.hbm [shape: f32[16,128], index: 1, kind: input, shape index: {}]   ;;  %s243_s2 = inlined_call_operand.hbm [shape: f32[1,8,128], index: 2, kind: output, shape index: {}]  }
   0x1   :  { %8 = vsyncpa [#allocation7], 0 }
   0x2   :  { %9 = vsyncpa [#allocation5], 0  ;;  %s210_s9 = smov [#allocation3]  }
   0x3   :  { %s19_s10 = sshll.u32 %s210_s9, 4  ;;  %s20_s10 = int_to_ptr.vmem [resolvable:$true] %s19_s10 }
   0x4   :  { %s152_s11 = scalar_lea.vmem %s20_s10, 256  ;;  %p157_p1 = scmp.lt.s32.totalorder %s20_s10, %s20_s10 }
   0x5   :  { %p153_p0 = scmp.ne.s32.totalorder %s20_s10, %s152_s11  ;;  %p158_p2 = scmp.lt.s32.totalorder %s152_s11, %s152_s11 }
   0x7   :  { %p159_p3 = por %p158_p2, %p157_p1 }
   0x9   :  { %p160_p4 = pnand %p159_p3, %p153_p0 }
   0xb   :  { %163 = shalt.err (!%p160_p4)
}
   0xc   :  { %s211_s12 = smov 128   ;;  %s212_s13 = smov 8  }
   0xd   :  { %25 = dma.hbm_to_vmem [thread:$0]  %s241_s0, 256, %s20_s10, [#allocation4], %s211_s12, %s211_s12, %s212_s13  }
   0xe   :  { %s213_s16 = smov [#allocation6]  }
   0xf   :  { %s35_s17 = sshll.u32 %s213_s16, 4  ;;  %s36_s17 = int_to_ptr.vmem [resolvable:$true] %s35_s17 }
  0x10   :  { %s172_s18 = scalar_lea.vmem %s36_s17, 256  ;;  %p177_p6 = scmp.lt.s32.totalorder %s36_s17, %s36_s17 }
  0x11   :  { %p173_p5 = scmp.ne.s32.totalorder %s36_s17, %s172_s18  ;;  %p178_p7 = scmp.lt.s32.totalorder %s172_s18, %s172_s18 }
  0x13   :  { %p179_p8 = por %p178_p7, %p177_p6 }
  0x15   :  { %p180_p9 = pnand %p179_p8, %p173_p5 }
  0x17   :  { %183 = shalt.err (!%p180_p9)
}
  0x18   :  { %41 = dma.hbm_to_vmem [thread:$0]  %s242_s1, 256, %s36_s17, [#allocation7], %s211_s12, %s211_s12, %s212_s13  }
  0x19   :  { %204 = dma.done.wait [#allocation4], 256  }
  0x1a   :  { %205 = vsyncadd [#allocation4], 4294967040 }
  0x1b   :  { %206 = dma.done.wait [#allocation7], 256  }
  0x1c   :  { %207 = vsyncadd [#allocation7], 4294967040  ;;  %v57_v0 = vld [vmem:[#allocation3] sm:$0xff]  ;;  %v58_v1 = vld [vmem:[#allocation3 + $0x8] sm:$0xff]  ;;  %v214_v28 = vmov 0.0   ;;  %s215_s0 = smov [#allocation8]  }
  0x1d   :  { %v67_v2 = vand.u32 2147483647, %v57_v0  ;;  %v68_v3 = vand.u32 2147483647, %v58_v1  ;;  %v59_v14 = vld [vmem:[#allocation6] sm:$0xff]  ;;  %v60_v15 = vld [vmem:[#allocation6 + $0x8] sm:$0xff] }
  0x1e   :  { %v61_v17 = vmax.f32 %v57_v0, 0.0  ;;  %v63_v18 = vmul.f32 %v59_v14, %v57_v0  ;;  %v62_v21 = vmax.f32 %v58_v1, 0.0  ;;  %v64_v22 = vmul.f32 %v60_v15, %v58_v1  ;;  %s120_s1 = sshll.u32 %s215_s0, 4  ;;  %s121_s1 = int_to_ptr.vmem [resolvable:$true] %s120_s1 }
  0x1f   :  { %v69_v4 = vsub.f32 0.0, %v67_v2  ;;  %v70_v5 = vsub.f32 0.0, %v68_v3  ;;  %vm97_vm0 = vcmp.eq.f32.partialorder %v59_v14, 1.0  ;;  %vm98_vm1 = vcmp.eq.f32.partialorder %v60_v15, 1.0  ;;  %s184_s21 = scalar_lea.vmem %s121_s1, 128  ;;  %p189_p11 = scmp.lt.s32.totalorder %s121_s1, %s121_s1 }
  0x20   :  { %vm95_vm2 = vcmp.eq.f32.partialorder %v59_v14, 0.0  ;;  %vm96_vm3 = vcmp.eq.f32.partialorder %v60_v15, 0.0  ;;  %v65_v26 = vsub.f32 %v61_v17, %v63_v18  ;;  %v99_v29 = vsel %vm97_vm0, 0.5, %v214_v28  ;;  %p185_p10 = scmp.ne.s32.totalorder %s121_s1, %s184_s21  ;;  %p190_p12 = scmp.lt.s32.totalorder %s184_s21, %s184_s21 }
  0x21   :  { %v71_v6 = vmul.f32 1.442695, %v69_v4  ;;  %v73_v7 = vmul.f32 1.442695, %v70_v5  ;;  %v66_v31 = vsub.f32 %v62_v21, %v64_v22  ;;  %v100_v33 = vsel %vm98_vm1, 0.5, %v214_v28 }
  0x22   :  { %v101_v36 = vsel %vm95_vm2, 0.5, %v99_v29  ;;  %v102_v39 = vsel %vm96_vm3, 0.5, %v100_v33  ;;  %p191_p13 = por %p190_p12, %p189_p11 }
  0x23   :  { %136 = vpow2.f32 %v71_v6 }
  0x24   :  { %138 = vpow2.f32 %v73_v7  ;;  %p192_p0 = pnand %p191_p13, %p185_p10 }
  0x30   :  { %v137_v8 = vpop.eup %136 }
  0x31   :  { %v139_v9 = vpop.eup %138  ;;  %v75_v10 = vadd.f32 1.0, %v137_v8  ;;  %v78_v12 = vmul.f32 -0.5, %v137_v8  ;;  %v81_v19 = vand.u32 2147483647, %v137_v8 }
  0x32   :  { %v84_v11 = vadd.f32 1.0, %v139_v9  ;;  %v87_v13 = vmul.f32 -0.5, %v139_v9  ;;  %v90_v23 = vand.u32 2147483647, %v139_v9 }
  0x33   :  { %140 = vlog2.f32 %v75_v10  ;;  %v79_v16 = vadd.f32 1.0, %v78_v12  ;;  %vm82_vm4 = vcmp.lt.f32.partialorder %v81_v19, 0.0004427343 }
  0x34   :  { %142 = vlog2.f32 %v84_v11  ;;  %v88_v20 = vadd.f32 1.0, %v87_v13  ;;  %vm91_vm5 = vcmp.lt.f32.partialorder %v90_v23, 0.0004427343 }
  0x35   :  { %v80_v24 = vmul.f32 %v137_v8, %v79_v16 }
  0x36   :  { %v89_v27 = vmul.f32 %v139_v9, %v88_v20 }
  0x40   :  { %v141_v25 = vpop.eup %140 }
  0x41   :  { %v143_v30 = vpop.eup %142  ;;  %v77_v32 = vmul.f32 0.6931472, %v141_v25 }
  0x42   :  { %v86_v34 = vmul.f32 0.6931472, %v143_v30 }
  0x43   :  { %v83_v35 = vsel %vm82_vm4, %v80_v24, %v77_v32 }
  0x44   :  { %v92_v37 = vsel %vm91_vm5, %v89_v27, %v86_v34  ;;  %v93_v38 = vadd.f32 %v83_v35, %v65_v26 }
  0x45   :  { %v94_v40 = vadd.f32 %v92_v37, %v66_v31 }
  0x46   :  { %v103_v41 = vmul.f32 %v101_v36, %v93_v38 }
  0x47   :  { %v104_v42 = vmul.f32 %v102_v39, %v94_v40 }
  0x49   :  { %v106_v43 = vadd.f32 %v104_v42, %v103_v41 }
  0x4b   :  { %113 = vst [vmem:[#allocation8] sm:$0xff] %v106_v43 }
  0x4c   :  { %195 = shalt.err (!%p192_p0)
}
  0x4d   :  { %123 = dma.vmem_to_hbm [thread:$0]  %s121_s1, 128, %s243_s2, [#allocation5]  }
  0x4e   :  { %208 = dma.done.wait [#allocation5], 128  }
  0x4f   :  { %209 = vsyncadd [#allocation5], 4294967168 }
  0x50   :  { %127 = vsyncpa [#allocation4], 1 }
  0x51   :  { %128 = vsyncpa [#allocation7], 1 }
  0x52   :  { %129 = vsyncpa [#allocation5], 1 }

</bundles_post_ra>
